<compile_context>
chip_gen: v5e
topology: v5e:2x2
jax: 0.10.0
libtpu: 0.0.40
codegen_flags: <defaults>
</compile_context>

<pallas_src>
import jax
import jax.numpy as jnp
from jax.experimental import pallas as pl
from jax.experimental.pallas import tpu as pltpu  # noqa: F401  (TPU backend registration)


def material_gcn_kernel(x_ref, adj_ref, w_ref, b_ref, out_ref):
    x = x_ref[...]              # [B, N, F]
    adj = adj_ref[...]          # [B, N, N]
    n = adj.shape[1]
    inv_n = 1.0 / n

    # Degrees of A = adj + I (identity never materialized).
    rowsum = jnp.sum(adj, axis=2) + 1.0                      # [B, N]
    r = jax.lax.rsqrt(rowsum)                                 # D^{-1/2} on the EUP
    r = jnp.where(jnp.isinf(r), 0.0, r)                       # matches torch isinf guard

    # Rank-1 pooled aggregation:  1^T A_norm = (r ⊙ (adjᵀ r + r))ᵀ   per graph.
    colsum = jnp.sum(adj * r[:, :, None], axis=1)             # adjᵀ r   [B, N] (sublane reduce)
    w = r * (colsum + r)                                      # [B, N]

    pooled = jnp.sum(x * w[:, :, None], axis=1) * inv_n       # (1/N)·wᵀx  [B, F]
    s = jnp.sum(w, axis=1, keepdims=True) * inv_n             # (1/N)·Σ w  [B, 1]

    # Batched output projection: one [B,F]@[F,out] MXU matmul + analytic bias.
    out = jnp.dot(pooled, w_ref[...], preferred_element_type=jnp.float32)  # [B, out]
    out_ref[...] = out + s * b_ref[...]


def material_gcn_forward(x, adj, w1, b1, w2, b2):
    """x: [B, N, F] node features of B independent graphs, adj: [B, N, N] (dense)."""
    B, N, F = x.shape
    out_features = w2.shape[1]

    # Fuse the two bias-only linears (exact: no nonlinearity between them).
    w_fused = w1 @ w2                                          # [F, out]
    b_fused = b1 @ w2 + b2                                     # [1, out]

    flops = B * (3 * N * N + 2 * N * F + 3 * N + 2 * F * out_features + out_features)
    bytes_accessed = 4 * (x.size + adj.size + w_fused.size + b_fused.size + B * out_features)

    out = pl.pallas_call(
        material_gcn_kernel,
        out_shape=jax.ShapeDtypeStruct((B, out_features), jnp.float32),
        # No grid: a single step with whole-array VMEM blocks (everything fits easily).
        in_specs=[
            pl.BlockSpec((B, N, F), lambda: (0, 0, 0)),        # all node features
            pl.BlockSpec((B, N, N), lambda: (0, 0, 0)),        # all adjacencies
            pl.BlockSpec((F, out_features), lambda: (0, 0)),   # fused weight
            pl.BlockSpec((1, out_features), lambda: (0, 0)),   # fused bias
        ],
        out_specs=pl.BlockSpec((B, out_features), lambda: (0, 0)),
        cost_estimate=pl.CostEstimate(
            flops=flops, transcendentals=B * N, bytes_accessed=bytes_accessed),
    )(x, adj, w_fused, b_fused)
    return out


material_gcn_forward = jax.jit(material_gcn_forward)


def init_params(key, in_features, out_features):
    hidden = out_features // 2
    k1, k2, k3, k4 = jax.random.split(key, 4)
    # kaiming_normal_ on nn.Linear weights -> std = sqrt(2 / fan_in); stored transposed.
    w1 = jax.random.normal(k1, (in_features, hidden), jnp.float32) * jnp.sqrt(2.0 / in_features)
    w2 = jax.random.normal(k2, (hidden, out_features), jnp.float32) * jnp.sqrt(2.0 / hidden)
    # nn.Linear default bias init: U(-1/sqrt(fan_in), 1/sqrt(fan_in))
    b1 = jax.random.uniform(k3, (1, hidden), jnp.float32,
                            -1.0 / jnp.sqrt(in_features), 1.0 / jnp.sqrt(in_features))
    b2 = jax.random.uniform(k4, (1, out_features), jnp.float32,
                            -1.0 / jnp.sqrt(hidden), 1.0 / jnp.sqrt(hidden))
    return w1, b1, w2, b2


def reference_forward(x, adj, w1, b1, w2, b2):
    """Pure-JAX transliteration of the PyTorch module, vmapped over graphs."""
    def single(xg, ag):
        h = xg @ w1 + b1
        h = h @ w2 + b2
        a = ag + jnp.eye(ag.shape[0], dtype=ag.dtype)
        rowsum = a.sum(1)
        r = rowsum ** -0.5
        r = jnp.where(jnp.isinf(r), 0.0, r)
        a_norm = jnp.diag(r) @ a @ jnp.diag(r)
        y = a_norm @ h
        return jnp.mean(y, axis=0)                             # global_mean_pool, batch=0
    return jax.vmap(single)(x, adj)                            # [B, out]


if __name__ == "__main__":
    B, n_nodes = 8, 8
    in_features, out_features = 16, 32

    key = jax.random.PRNGKey(0)
    kx, kadj, kp = jax.random.split(key, 3)

    x = jax.random.normal(kx, (B, n_nodes, in_features), jnp.float32)
    adj = jax.random.uniform(kadj, (B, n_nodes, n_nodes), jnp.float32)
    w1, b1, w2, b2 = init_params(kp, in_features, out_features)

    out = jax.block_until_ready(material_gcn_forward(x, adj, w1, b1, w2, b2))
    ref = reference_forward(x, adj, w1, b1, w2, b2)

    assert out.shape == (B, out_features)
    assert jnp.allclose(out, ref, atol=1e-4, rtol=1e-4), float(jnp.max(jnp.abs(out - ref)))

    print("KERNEL_OK")
</pallas_src>

<mosaic_0001>
module attributes {stable_mosaic.version = 11 : i64} {
  func.func @material_gcn_kernel(%arg0: memref<8x8x16xf32, #tpu.memory_space<vmem>>, %arg1: memref<8x8x8xf32, #tpu.memory_space<vmem>>, %arg2: memref<16x32xf32, #tpu.memory_space<vmem>>, %arg3: memref<1x32xf32, #tpu.memory_space<vmem>>, %arg4: memref<8x32xf32, #tpu.memory_space<vmem>>) attributes {dimension_semantics = [], scalar_prefetch = 0 : i64, scratch_operands = 0 : i64, tpu.core_type = #tpu.core_type<tc>} {
    %c0 = arith.constant 0 : index
    %c0_0 = arith.constant 0 : index
    %c0_1 = arith.constant 0 : index
    %0 = vector.load %arg0[%c0, %c0_0, %c0_1] : memref<8x8x16xf32, #tpu.memory_space<vmem>>, vector<8x8x16xf32>
    %c0_2 = arith.constant 0 : index
    %c0_3 = arith.constant 0 : index
    %c0_4 = arith.constant 0 : index
    %1 = vector.load %arg1[%c0_2, %c0_3, %c0_4] : memref<8x8x8xf32, #tpu.memory_space<vmem>>, vector<8x8x8xf32>
    %cst = arith.constant dense<0.000000e+00> : vector<8x8xf32>
    %2 = vector.multi_reduction <add>, %1, %cst [2] : vector<8x8x8xf32> to vector<8x8xf32>
    %cst_5 = arith.constant 1.000000e+00 : f32
    %3 = vector.broadcast %cst_5 : f32 to vector<8x8xf32>
    %4 = arith.addf %2, %3 : vector<8x8xf32>
    %5 = math.rsqrt %4 : vector<8x8xf32>
    %6 = math.absf %5 : vector<8x8xf32>
    %cst_6 = arith.constant 0x7F800000 : f32
    %7 = vector.broadcast %cst_6 : f32 to vector<8x8xf32>
    %8 = arith.cmpf oeq, %6, %7 : vector<8x8xf32>
    %cst_7 = arith.constant 0.000000e+00 : f32
    %9 = vector.broadcast %cst_7 : f32 to vector<8x8xf32>
    %10 = arith.select %8, %9, %5 : vector<8x8xi1>, vector<8x8xf32>
    %11 = vector.shape_cast %10 : vector<8x8xf32> to vector<8x8x1xf32>
    %12 = vector.broadcast %11 : vector<8x8x1xf32> to vector<8x8x8xf32>
    %13 = arith.mulf %1, %12 : vector<8x8x8xf32>
    %cst_8 = arith.constant dense<0.000000e+00> : vector<8x8xf32>
    %14 = vector.multi_reduction <add>, %13, %cst_8 [1] : vector<8x8x8xf32> to vector<8x8xf32>
    %15 = arith.addf %14, %10 : vector<8x8xf32>
    %16 = arith.mulf %10, %15 : vector<8x8xf32>
    %17 = vector.shape_cast %16 : vector<8x8xf32> to vector<8x8x1xf32>
    %18 = vector.broadcast %17 : vector<8x8x1xf32> to vector<8x8x16xf32>
    %19 = arith.mulf %0, %18 : vector<8x8x16xf32>
    %cst_9 = arith.constant dense<0.000000e+00> : vector<8x16xf32>
    %20 = vector.multi_reduction <add>, %19, %cst_9 [1] : vector<8x8x16xf32> to vector<8x16xf32>
    %cst_10 = arith.constant 1.250000e-01 : f32
    %21 = vector.broadcast %cst_10 : f32 to vector<8x16xf32>
    %22 = arith.mulf %20, %21 : vector<8x16xf32>
    %cst_11 = arith.constant dense<0.000000e+00> : vector<8xf32>
    %23 = vector.multi_reduction <add>, %16, %cst_11 [1] : vector<8x8xf32> to vector<8xf32>
    %24 = vector.shape_cast %23 : vector<8xf32> to vector<8x1xf32>
    %cst_12 = arith.constant 1.250000e-01 : f32
    %25 = vector.broadcast %cst_12 : f32 to vector<8x1xf32>
    %26 = arith.mulf %24, %25 : vector<8x1xf32>
    %c0_13 = arith.constant 0 : index
    %c0_14 = arith.constant 0 : index
    %27 = vector.load %arg2[%c0_13, %c0_14] : memref<16x32xf32, #tpu.memory_space<vmem>>, vector<16x32xf32>
    %cst_15 = arith.constant dense<0.000000e+00> : vector<8x32xf32>
    %28 = tpu.matmul %22, %27, %cst_15 {dimension_numbers = #tpu.dot_dimension_numbers<[1], [0], [0], [1], [0, 0, 1, 1], [], []>} : vector<8x16xf32>, vector<16x32xf32>, vector<8x32xf32> -> vector<8x32xf32>
    %c0_16 = arith.constant 0 : index
    %c0_17 = arith.constant 0 : index
    %29 = vector.load %arg3[%c0_16, %c0_17] : memref<1x32xf32, #tpu.memory_space<vmem>>, vector<1x32xf32>
    %30 = vector.broadcast %26 : vector<8x1xf32> to vector<8x32xf32>
    %31 = vector.broadcast %29 : vector<1x32xf32> to vector<8x32xf32>
    %32 = arith.mulf %30, %31 : vector<8x32xf32>
    %33 = arith.addf %28, %32 : vector<8x32xf32>
    %c0_18 = arith.constant 0 : index
    %c0_19 = arith.constant 0 : index
    %34 = vector.load %arg4[%c0_18, %c0_19] : memref<8x32xf32, #tpu.memory_space<vmem>>, vector<8x32xf32>
    tpu.vector_store %arg4[%c0_18, %c0_19], %33 {strides = array<i32>} : memref<8x32xf32, #tpu.memory_space<vmem>>, vector<8x32xf32>,
    return
  }
}

</mosaic_0001>

<bundles_post_ra>
// kernel: material_gcn_forward.1
= control target key start
LH: loop header
LB: loop body
LE: loop exit
PB: predicated region body
PF: predicated region fallthrough
CT: control target
= control target key end

     0   :  { %9 = vsyncpa [#allocation3], 0  ;;  %s909_s0 = inlined_call_operand.vmem [shape: f32[8,8,16], index: 0, kind: input, shape index: {}]   ;;  %s910_s1 = inlined_call_operand.hbm [shape: f32[8,8,8], index: 1, kind: input, shape index: {}]   ;;  %s911_s2 = inlined_call_operand.vmem [shape: f32[16,32], index: 2, kind: input, shape index: {}]   ;;  %s912_s3 = inlined_call_operand.vmem [shape: f32[1,32], index: 3, kind: input, shape index: {}]   ;;  %s913_s4 = inlined_call_operand.hbm [shape: f32[8,32], index: 4, kind: output, shape index: {}]  }
   0x1   :  { %10 = vsyncpa [#allocation4], 0  ;;  %s17_s17 = sshll.u32 %s910_s1, 4  ;;  %s649_s18 = smov [#allocation2]   ;;  %s18_s17 = int_to_ptr.hbm [resolvable:$true] %s17_s17 }
   0x2   :  { %s19_s19 = sshll.u32 %s649_s18, 4  ;;  %s650_s20 = smov 128   ;;  %s20_s19 = int_to_ptr.vmem [resolvable:$true] %s19_s19 }
   0x3   :  { %s651_s21 = smov 8  }
   0x4   :  { %25 = dma.hbm_to_vmem [thread:$0]  %s18_s17, 1024, %s20_s19, [#allocation3], %s650_s20, %s650_s20, %s651_s21  }
   0x5   :  { %645 = dma.done.wait [#allocation3], 1024  }
   0x6   :  { %646 = vsyncadd [#allocation3], 4294966272  ;;  %vm50_vm0 = vcmask 64512   ;;  %v682_v0 = vld [vmem:[#allocation2 + $0x20] sm:$0xff]  ;;  %v684_v1 = vld [vmem:[#allocation2 + $0x10] sm:$0xff]  ;;  %v259_v22 = vlaneseq  ;;  %s653_s15 = smov [#allocation5]  }
   0x7   :  { %v686_v2 = vld [vmem:[#allocation2] sm:$0xff]  ;;  %v63_v3 = vsel %vm50_vm0, %v682_v0, 0.0  ;;  %v57_v4 = vsel %vm50_vm0, %v684_v1, 0.0  ;;  %v694_v6 = vld [vmem:[#allocation2 + $0x28] sm:$0xff]  ;;  %v696_v7 = vld [vmem:[#allocation2 + $0x18] sm:$0xff]  ;;  %s556_s16 = sshll.u32 %s653_s15, 4  ;;  %s557_s16 = int_to_ptr.vmem [resolvable:$true] %s556_s16 }
   0x8   :  { %v51_v5 = vsel %vm50_vm0, %v686_v2, 0.0  ;;  %64 = vadd.xlane.f32.xlu2 %v63_v3  ;;  %58 = vadd.xlane.f32.xlu1 %v57_v4  ;;  %v698_v8 = vld [vmem:[#allocation2 + $0x8] sm:$0xff]  ;;  %v66_v9 = vsel %vm50_vm0, %v694_v6, 0.0  ;;  %v60_v10 = vsel %vm50_vm0, %v696_v7, 0.0  ;;  %v706_v12 = vld [vmem:[#allocation2 + $0x38] sm:$0xff]  ;;  %v708_v13 = vld [vmem:[#allocation2 + $0x30] sm:$0xff] }
   0x9   :  { %52 = vadd.xlane.f32.xlu0 %v51_v5  ;;  %v54_v11 = vsel %vm50_vm0, %v698_v8, 0.0  ;;  %v72_v14 = vsel %vm50_vm0, %v706_v12, 0.0  ;;  %v69_v15 = vsel %vm50_vm0, %v708_v13, 0.0  ;;  %v295_v23 = vshrl.u32 %v259_v22, 7  ;;  %s558_s19 = sshll.u32 %s913_s4, 4  ;;  %s559_s19 = int_to_ptr.hbm [resolvable:$true] %s558_s19 }
   0xa   :  { %v728_v41 = vand.u32 127, %v259_v22 }
   0xb   :  { %576 = vset.pattern.permute.xlu1 %v295_v23  ;;  %574 = vset.pattern.permute.xlu2 %v295_v23 }
   0xc   :  { %575 = vset.pattern.permute.xlu0 %v295_v23 }
  0x10   :  { %67 = vadd.xlane.f32.xlu2 %v66_v9  ;;  %61 = vadd.xlane.f32.xlu1 %v60_v10 }
  0x11   :  { %55 = vadd.xlane.f32.xlu0 %v54_v11 }
  0x18   :  { %73 = vadd.xlane.f32.xlu1 %v72_v14 }
  0x19   :  { %70 = vadd.xlane.f32.xlu0 %v69_v15 }
  0x7b   :  { %v65_v16 = vpop.xlane.xlu2 %64  ;;  %v59_v17 = vpop.xlane.xlu1 %58 }
  0x7c   :  { %v714_v18 = vadd.f32 1.0, %v65_v16  ;;  %v77_v19 = vadd.f32 1.0, %v59_v17  ;;  %v53_v20 = vpop.xlane.xlu0 %52 }
  0x7d   :  { %v75_v21 = vadd.f32 1.0, %v53_v20 }
  0x7e   :  { %581 = vrsqrt.f32 %v714_v18  ;;  %vm129_vm1 = vweird.f32 %v714_v18  ;;  %vm109_vm4 = vweird.f32 %v77_v19 }
  0x7f   :  { %583 = vrsqrt.f32 %v77_v19  ;;  %vm89_vm2 = vweird.f32 %v75_v21 }
  0x80   :  { %585 = vrsqrt.f32 %v75_v21 }
  0x83   :  { %v68_v24 = vpop.xlane.xlu2 %67  ;;  %v62_v25 = vpop.xlane.xlu1 %61 }
  0x84   :  { %v582_v26 = vpop.eup %581  ;;  %v717_v27 = vadd.f32 1.0, %v68_v24  ;;  %v719_v28 = vadd.f32 1.0, %v62_v25  ;;  %v56_v29 = vpop.xlane.xlu0 %55 }
  0x85   :  { %v584_v30 = vpop.eup %583  ;;  %v124_v31 = vmul.f32 %v582_v26, %v714_v18  ;;  %v722_v32 = vadd.f32 1.0, %v56_v29  ;;  %vm130_vm6 = vweird.f32 %v582_v26 }
  0x86   :  { %v586_v33 = vpop.eup %585  ;;  %v104_v34 = vmul.f32 %v584_v30, %v77_v19  ;;  %587 = vrsqrt.f32 %v717_v27  ;;  %vm110_vm5 = vweird.f32 %v584_v30  ;;  %vm139_vm7 = vweird.f32 %v717_v27  ;;  %vm131_vm13 = vmor %vm129_vm1, %vm130_vm6 }
  0x87   :  { %v125_v35 = vmul.f32 %v582_v26, %v124_v31  ;;  %v84_v36 = vmul.f32 %v586_v33, %v75_v21  ;;  %589 = vrsqrt.f32 %v719_v28  ;;  %vm90_vm3 = vweird.f32 %v586_v33  ;;  %vm111_vm9 = vmor %vm109_vm4, %vm110_vm5 }
  0x88   :  { %v105_v37 = vmul.f32 %v584_v30, %v104_v34  ;;  %591 = vrsqrt.f32 %v722_v32  ;;  %vm91_vm8 = vmor %vm89_vm2, %vm90_vm3  ;;  %vm119_vm10 = vweird.f32 %v719_v28  ;;  %vm99_vm12 = vweird.f32 %v722_v32 }
  0x89   :  { %v126_v38 = vmul.f32 0.5, %v125_v35  ;;  %v85_v39 = vmul.f32 %v586_v33, %v84_v36 }
  0x8a   :  { %v106_v40 = vmul.f32 0.5, %v105_v37 }
  0x8b   :  { %v127_v42 = vsub.f32 1.5, %v126_v38  ;;  %v86_v43 = vmul.f32 0.5, %v85_v39  ;;  %v74_v44 = vpop.xlane.xlu1 %73 }
  0x8c   :  { %v588_v45 = vpop.eup %587  ;;  %v107_v46 = vsub.f32 1.5, %v106_v40  ;;  %v730_v47 = vadd.f32 1.0, %v74_v44  ;;  %v71_v58 = vpop.xlane.xlu0 %70 }
  0x8d   :  { %v590_v48 = vpop.eup %589  ;;  %v87_v49 = vsub.f32 1.5, %v86_v43  ;;  %v134_v50 = vmul.f32 %v588_v45, %v717_v27  ;;  %v128_v52 = vmul.f32 %v582_v26, %v127_v42  ;;  %vm140_vm11 = vweird.f32 %v588_v45 }
  0x8e   :  { %v592_v51 = vpop.eup %591  ;;  %v108_v53 = vmul.f32 %v584_v30, %v107_v46  ;;  %v114_v54 = vmul.f32 %v590_v48, %v719_v28  ;;  %593 = vrsqrt.f32 %v730_v47  ;;  %v746_v10 = vadd.f32 1.0, %v71_v58  ;;  %vm141_vm1 = vmor %vm139_vm7, %vm140_vm11 }
  0x8f   :  { %v88_v55 = vmul.f32 %v586_v33, %v87_v49  ;;  %v135_v56 = vmul.f32 %v588_v45, %v134_v50  ;;  %v94_v57 = vmul.f32 %v592_v51, %v722_v32  ;;  %v744_v4 = vsel %vm131_vm13, %v582_v26, %v128_v52 }
  0x90   :  { %v112_v59 = vsel %vm111_vm9, %v584_v30, %v108_v53  ;;  %v115_v60 = vmul.f32 %v590_v48, %v114_v54  ;;  %vm100_vm14 = vweird.f32 %v592_v51  ;;  %vm120_vm2 = vweird.f32 %v590_v48 }
  0x91   :  { %v165_v61 = vand.u32 2147483647, %v112_v59  ;;  %v92_v62 = vsel %vm91_vm8, %v586_v33, %v88_v55  ;;  %v136_v63 = vmul.f32 0.5, %v135_v56  ;;  %v95_v3 = vmul.f32 %v592_v51, %v94_v57  ;;  %vm101_vm3 = vmor %vm99_vm12, %vm100_vm14 }
  0x92   :  { %v163_v5 = vand.u32 2147483647, %v92_v62  ;;  %v116_v9 = vmul.f32 0.5, %v115_v60  ;;  %595 = vrsqrt.f32 %v746_v10  ;;  %v167_v18 = vand.u32 2147483647, %v744_v4  ;;  %vm121_vm6 = vmor %vm119_vm10, %vm120_vm2 }
  0x93   :  { %v137_v11 = vsub.f32 1.5, %v136_v63  ;;  %v96_v14 = vmul.f32 0.5, %v95_v3  ;;  %vm173_vm15 = vcmp.eq.f32.partialorder %v165_v61, inf  ;;  %vm159_vm4 = vweird.f32 %v730_v47 }
  0x94   :  { %v594_v15 = vpop.eup %593  ;;  %v117_v16 = vsub.f32 1.5, %v116_v9  ;;  %v749_v17 = vsel %vm173_vm15, 0.0, %v112_v59  ;;  %vm171_vm5 = vcmp.eq.f32.partialorder %v163_v5, inf  ;;  %vm149_vm7 = vweird.f32 %v746_v10 }
  0x95   :  { %v138_v19 = vmul.f32 %v588_v45, %v137_v11  ;;  %v97_v20 = vsub.f32 1.5, %v96_v14  ;;  %v154_v21 = vmul.f32 %v594_v15, %v730_v47  ;;  %v189_v23 = vmul.f32 %v749_v17, %v684_v1 }
  0x96   :  { %v118_v22 = vmul.f32 %v590_v48, %v117_v16  ;;  %v763_v27 = vsel %vm171_vm5, 0.0, %v92_v62  ;;  %vm160_vm9 = vweird.f32 %v594_v15  ;;  %vm786_vm14 = vcmp.eq.f32.partialorder %v167_v18, inf }
  0x97   :  { %v142_v24 = vsel %vm141_vm1, %v588_v45, %v138_v19  ;;  %v98_v25 = vmul.f32 %v592_v51, %v97_v20  ;;  %v155_v26 = vmul.f32 %v594_v15, %v154_v21  ;;  %v209_v31 = vsel %vm50_vm0, %v189_v23, 0.0  ;;  %vm161_vm12 = vmor %vm159_vm4, %vm160_vm9 }
  0x98   :  { %v168_v29 = vand.u32 2147483647, %v142_v24  ;;  %v122_v30 = vsel %vm121_vm6, %v590_v48, %v118_v22  ;;  %v187_v32 = vmul.f32 %v763_v27, %v686_v2  ;;  %v210_v1 = vrot.slane %v209_v31, 4  ;;  %v596_v36 = vpop.eup %595 }
  0x99   :  { %v166_v33 = vand.u32 2147483647, %v122_v30  ;;  %v102_v34 = vsel %vm101_vm3, %v592_v51, %v98_v25  ;;  %v156_v35 = vmul.f32 0.5, %v155_v26  ;;  %v144_v39 = vmul.f32 %v596_v36, %v746_v10 }
  0x9a   :  { %v164_v37 = vand.u32 2147483647, %v102_v34  ;;  %v195_v28 = vsel %vm50_vm0, %v187_v32, 0.0  ;;  %vm176_vm8 = vcmp.eq.f32.partialorder %v168_v29, inf  ;;  %v211_v40 = vadd.f32 %v210_v1, %v209_v31 }
  0x9b   :  { %v157_v38 = vsub.f32 1.5, %v156_v35  ;;  %v196_v42 = vrot.slane %v195_v28, 4  ;;  %v771_v43 = vsel %vm176_vm8, 0.0, %v142_v24  ;;  %vm174_vm10 = vcmp.eq.f32.partialorder %v166_v33, inf }
  0x9c   :  { %vm172_vm11 = vcmp.eq.f32.partialorder %v164_v37, inf  ;;  %v145_v44 = vmul.f32 %v596_v36, %v144_v39  ;;  %v212_v45 = vrot.slane %v211_v40, 2  ;;  %v192_v46 = vmul.f32 %v771_v43, %v694_v6 }
  0x9d   :  { %v158_v2 = vmul.f32 %v594_v15, %v157_v38  ;;  %vm150_vm13 = vweird.f32 %v596_v36  ;;  %v197_v48 = vadd.f32 %v196_v42, %v195_v28  ;;  %v777_v49 = vsel %vm174_vm10, 0.0, %v122_v30 }
  0x9e   :  { %v779_v50 = vsel %vm172_vm11, 0.0, %v102_v34  ;;  %v146_v52 = vmul.f32 0.5, %v145_v44  ;;  %v213_v53 = vadd.f32 %v212_v45, %v211_v40  ;;  %v230_v54 = vsel %vm50_vm0, %v192_v46, 0.0  ;;  %vm151_vm15 = vmor %vm149_vm7, %vm150_vm13 }
  0x9f   :  { %v162_v51 = vsel %vm161_vm12, %v594_v15, %v158_v2  ;;  %v198_v56 = vrot.slane %v197_v48, 2  ;;  %v231_v57 = vrot.slane %v230_v54, 4  ;;  %v190_v6 = vmul.f32 %v777_v49, %v696_v7 }
  0xa0   :  { %v170_v55 = vand.u32 2147483647, %v162_v51  ;;  %v147_v58 = vsub.f32 1.5, %v146_v52  ;;  %v214_v47 = vrot.slane %v213_v53, 1  ;;  %v188_v59 = vmul.f32 %v779_v50, %v698_v8 }
  0xa1   :  { %v263_v61 = vperm.slane %v749_v17, %v728_v41  ;;  %v199_v62 = vadd.f32 %v198_v56, %v197_v48  ;;  %v232_v63 = vadd.f32 %v231_v57, %v230_v54  ;;  %v216_v7 = vsel %vm50_vm0, %v190_v6, 0.0 }
  0xa2   :  { %v148_v3 = vmul.f32 %v596_v36, %v147_v58  ;;  %v215_v5 = vadd.f32 %v214_v47, %v213_v53  ;;  %v217_v9 = vrot.slane %v216_v7, 4  ;;  %v202_v8 = vsel %vm50_vm0, %v188_v59, 0.0 }
  0xa3   :  { %v200_v11 = vrot.slane %v199_v62, 1  ;;  %v233_v14 = vrot.slane %v232_v63, 2  ;;  %v203_v15 = vrot.slane %v202_v8, 4  ;;  %vm178_vm2 = vcmp.eq.f32.partialorder %v170_v55, inf }
  0xa4   :  { %v152_v16 = vsel %vm151_vm15, %v596_v36, %v148_v3  ;;  %v279_v18 = vadd.f32 %v263_v61, %v215_v5  ;;  %v218_v10 = vadd.f32 %v217_v9, %v216_v7  ;;  %v797_v19 = vsel %vm178_vm2, 0.0, %v162_v51 }
  0xa5   :  { %v201_v20 = vadd.f32 %v200_v11, %v199_v62  ;;  %v261_v21 = vperm.slane %v763_v27, %v728_v41  ;;  %v234_v22 = vadd.f32 %v233_v14, %v232_v63  ;;  %v204_v23 = vadd.f32 %v203_v15, %v202_v8 }
  0xa6   :  { %v169_v24 = vand.u32 2147483647, %v152_v16  ;;  %v307_v25 = vperm.slane %v279_v18, 0  ;;  %v219_v26 = vrot.slane %v218_v10, 2  ;;  %v194_v29 = vmul.f32 %v797_v19, %v706_v12 }
  0xa7   :  { %v277_v30 = vadd.f32 %v261_v21, %v201_v20  ;;  %v235_v31 = vrot.slane %v234_v22, 1  ;;  %v205_v32 = vrot.slane %v204_v23, 2  ;;  %v806_v33 = vsel %vm786_vm14, 0.0, %v744_v4 }
  0xa8   :  { %312 = vperm.xlu1 %576, %v307_v25   ;;  %v266_v34 = vperm.slane %v771_v43, %v728_v41  ;;  %v220_v35 = vadd.f32 %v219_v26, %v218_v10  ;;  %v244_v1 = vsel %vm50_vm0, %v194_v29, 0.0  ;;  %v191_v36 = vmul.f32 %v806_v33, %v682_v0 }
  0xa9   :  { %v293_v37 = vperm.slane %v277_v30, 0  ;;  %v236_v12 = vadd.f32 %v235_v31, %v234_v22  ;;  %v206_v28 = vadd.f32 %v205_v32, %v204_v23  ;;  %v245_v38 = vrot.slane %v244_v1, 4 }
  0xaa   :  { %v221_v39 = vrot.slane %v220_v35, 1  ;;  %v223_v40 = vsel %vm50_vm0, %v191_v36, 0.0  ;;  %vm177_vm1 = vcmp.eq.f32.partialorder %v169_v24, inf  ;;  %v264_v46 = vperm.slane %v777_v49, %v728_v41 }
  0xab   :  { %298 = vperm.xlu2 %574, %v293_v37   ;;  %v282_v4 = vadd.f32 %v266_v34, %v236_v12  ;;  %v207_v42 = vrot.slane %v206_v28, 1  ;;  %v246_v2 = vadd.f32 %v245_v38, %v244_v1  ;;  %v224_v44 = vrot.slane %v223_v40, 4 }
  0xac   :  { %v222_v45 = vadd.f32 %v221_v39, %v220_v35  ;;  %v262_v0 = vperm.slane %v779_v50, %v728_v41  ;;  %v818_v48 = vsel %vm177_vm1, 0.0, %v152_v16  ;;  %v268_v3 = vperm.slane %v797_v19, %v728_v41 }
  0xad   :  { %v328_v51 = vperm.slane %v282_v4, 0  ;;  %v208_v52 = vadd.f32 %v207_v42, %v206_v28  ;;  %v247_v53 = vrot.slane %v246_v2, 2  ;;  %v225_v54 = vadd.f32 %v224_v44, %v223_v40 }
  0xae   :  { %v280_v55 = vadd.f32 %v264_v46, %v222_v45  ;;  %v193_v56 = vmul.f32 %v818_v48, %v708_v13  ;;  %v265_v11 = vperm.slane %v806_v33, %v728_v41  ;;  %v267_v21 = vperm.slane %v818_v48, %v728_v41 }
  0xaf   :  { %v278_v57 = vadd.f32 %v262_v0, %v208_v52  ;;  %v248_v6 = vadd.f32 %v247_v53, %v246_v2  ;;  %v226_v58 = vrot.slane %v225_v54, 2  ;;  %v652_v25 = vmov 0   ;;  %v37_v2 = vld [vmem:[%s909_s0 + $0x18] sm:$0xff] }
  0xb0   :  { %333 = vperm.xlu1 %576, %v328_v51   ;;  %v314_v47 = vperm.slane %v280_v55, 0  ;;  %v237_v59 = vsel %vm50_vm0, %v193_v56, 0.0  ;;  %vm413_vm3 = vcmask 130048   ;;  %v505_v51 = vld [vmem:[%s911_s2] sm:$0xff]  ;;  %vm486_vm4 = vcmask 1041409  }
  0xb1   :  { %v300_v60 = vperm.slane %v278_v57, 0  ;;  %v249_v61 = vrot.slane %v248_v6, 1  ;;  %v227_v62 = vadd.f32 %v226_v58, %v225_v54  ;;  %v238_v63 = vrot.slane %v237_v59, 4  ;;  %v36_v54 = vld [vmem:[%s909_s0 + $0x10] sm:$0xff] }
  0xb2   :  { %v40_v58 = vld [vmem:[%s909_s0 + $0x30] sm:$0xff]  ;;  %vm488_vm5 = vcmask 1042434   ;;  %vm490_vm6 = vcmask 1043459   ;;  %vm492_vm7 = vcmask 1044484   ;;  %vm494_vm8 = vcmask 1045509  }
  0xb3   :  { %319 = vperm.xlu2 %574, %v314_v47   ;;  %305 = vperm.xlu0 %575, %v300_v60   ;;  %v250_v7 = vadd.f32 %v249_v61, %v248_v6  ;;  %v228_v5 = vrot.slane %v227_v62, 1  ;;  %v239_v9 = vadd.f32 %v238_v63, %v237_v59  ;;  %vm496_vm9 = vcmask 1046534  }
  0xb4   :  { %vm498_vm10 = vcmask 1047559  }
  0xb5   :  { %v284_v13 = vadd.f32 %v268_v3, %v250_v7  ;;  %v229_v8 = vadd.f32 %v228_v5, %v227_v62  ;;  %v240_v14 = vrot.slane %v239_v9, 2 }
  0xb7   :  { %v342_v15 = vperm.slane %v284_v13, 0  ;;  %v281_v16 = vadd.f32 %v265_v11, %v229_v8  ;;  %v241_v18 = vadd.f32 %v240_v14, %v239_v9  ;;  %v38_v14 = vld [vmem:[%s909_s0 + $0x20] sm:$0xff] }
  0xb9   :  { %347 = vperm.xlu1 %576, %v342_v15   ;;  %v321_v10 = vperm.slane %v281_v16, 0  ;;  %v242_v20 = vrot.slane %v241_v18, 1 }
  0xbb   :  { %326 = vperm.xlu2 %574, %v321_v10   ;;  %v243_v22 = vadd.f32 %v242_v20, %v241_v18  ;;  %577 = vset.pattern.permute.xlu0 %v652_v25  ;;  %v39_v10 = vld [vmem:[%s909_s0 + $0x28] sm:$0xff] }
  0xbd   :  { %v283_v23 = vadd.f32 %v267_v21, %v243_v22 }
  0xbf   :  { %v335_v24 = vperm.slane %v283_v23, 0 }
  0xc1   :  { %579 = vset.pattern.permute.xlu1 %v652_v25 }
  0xc3   :  { %340 = vperm.xlu2 %574, %v335_v24  }
  0xcb   :  { %578 = vset.pattern.permute.xlu2 %v652_v25 }
 0x105   :  { %v299_v26 = vpop.permute.xlu2 %298 }
 0x106   :  { %v357_v29 = vmul.f32 %v299_v26, %v763_v27 }
 0x108   :  { %367 = vperm.xlu0 %577, %v357_v29  }
 0x10d   :  { %v320_v30 = vpop.permute.xlu2 %319 }
 0x10e   :  { %v360_v38 = vmul.f32 %v320_v30, %v777_v49 }
 0x115   :  { %v327_v34 = vpop.permute.xlu2 %326 }
 0x116   :  { %v361_v1 = vmul.f32 %v327_v34, %v806_v33 }
 0x11a   :  { %v313_v31 = vpop.permute.xlu1 %312 }
 0x11b   :  { %v359_v32 = vmul.f32 %v313_v31, %v749_v17 }
 0x11d   :  { %377 = vperm.xlu1 %579, %v359_v32   ;;  %v341_v17 = vpop.permute.xlu2 %340 }
 0x11e   :  { %v363_v39 = vmul.f32 %v341_v17, %v818_v48  ;;  %v506_v48 = vld [vmem:[%s911_s2 + $0x8] sm:$0xff] }
 0x11f   :  { %543 = vmatpush.msra.mxu0 %v506_v48 }
 0x121   :  { %544 = vmatpush.msra.mxu0 %v505_v51 }
 0x122   :  { %v334_v35 = vpop.permute.xlu1 %333 }
 0x123   :  { %v362_v36 = vmul.f32 %v334_v35, %v771_v43  ;;  %v34_v43 = vld [vmem:[%s909_s0] sm:$0xff] }
 0x125   :  { %v306_v37 = vpop.permute.xlu0 %305  ;;  %387 = vperm.xlu1 %579, %v361_v1   ;;  %392 = vperm.xlu0 %577, %v362_v36  }
 0x126   :  { %v358_v12 = vmul.f32 %v306_v37, %v779_v50  ;;  %v35_v50 = vld [vmem:[%s909_s0 + $0x8] sm:$0xff] }
 0x128   :  { %372 = vperm.xlu2 %578, %v358_v12  }
 0x12b   :  { %v348_v28 = vpop.permute.xlu1 %347 }
 0x12c   :  { %v364_v27 = vmul.f32 %v348_v28, %v797_v19 }
 0x12e   :  { %402 = vperm.xlu1 %579, %v364_v27  }
 0x130   :  { %382 = vperm.xlu2 %578, %v360_v38  }
 0x138   :  { %397 = vperm.xlu2 %578, %v363_v39  }
 0x17a   :  { %v368_v33 = vpop.permute.xlu0 %367 }
 0x17b   :  { %v405_v40 = vmul.f32 %v368_v33, %v34_v43  ;;  %v478_v5 = vperm.slane %v368_v33, %v728_v41 }
 0x17d   :  { %v414_v49 = vsel %vm413_vm3, %v405_v40, 0.0 }
 0x17e   :  { %v415_v44 = vrot.slane %v414_v49, 4 }
 0x180   :  { %v416_v52 = vadd.f32 %v415_v44, %v414_v49 }
 0x182   :  { %v373_v4 = vpop.permute.xlu2 %372  ;;  %v417_v47 = vrot.slane %v416_v52, 2 }
 0x183   :  { %v406_v19 = vmul.f32 %v373_v4, %v35_v50  ;;  %v479_v60 = vperm.slane %v373_v4, %v728_v41 }
 0x184   :  { %v418_v13 = vadd.f32 %v417_v47, %v416_v52 }
 0x185   :  { %v421_v42 = vsel %vm413_vm3, %v406_v19, 0.0  ;;  %v487_v16 = vsel %vm486_vm4, %v479_v60, %v478_v5  ;;  %v41_v19 = vld [vmem:[%s909_s0 + $0x38] sm:$0xff] }
 0x186   :  { %v422_v45 = vrot.slane %v421_v42, 4  ;;  %v419_v30 = vrot.slane %v418_v13, 1 }
 0x188   :  { %v423_v55 = vadd.f32 %v422_v45, %v421_v42  ;;  %v420_v33 = vadd.f32 %v419_v30, %v418_v13 }
 0x18a   :  { %v383_v46 = vpop.permute.xlu2 %382  ;;  %v424_v59 = vrot.slane %v423_v55, 2  ;;  %v470_v48 = vmul.f32 0.125, %v420_v33 }
 0x18b   :  { %v408_v0 = vmul.f32 %v383_v46, %v37_v2  ;;  %v481_v25 = vperm.slane %v383_v46, %v728_v41 }
 0x18c   :  { %v425_v15 = vadd.f32 %v424_v59, %v423_v55 }
 0x18d   :  { %v435_v53 = vsel %vm413_vm3, %v408_v0, 0.0 }
 0x18e   :  { %v436_v57 = vrot.slane %v435_v53, 4  ;;  %v426_v34 = vrot.slane %v425_v15, 1 }
 0x18f   :  { %v378_v56 = vpop.permute.xlu1 %377 }
 0x190   :  { %v407_v6 = vmul.f32 %v378_v56, %v36_v54  ;;  %v480_v7 = vperm.slane %v378_v56, %v728_v41  ;;  %v437_v9 = vadd.f32 %v436_v57, %v435_v53  ;;  %v427_v50 = vadd.f32 %v426_v34, %v425_v15 }
 0x192   :  { %v428_v61 = vsel %vm413_vm3, %v407_v6, 0.0  ;;  %v863_v62 = vpop.permute.xlu2 %397  ;;  %v489_v21 = vsel %vm488_vm5, %v480_v7, %v487_v16  ;;  %v438_v24 = vrot.slane %v437_v9, 2  ;;  %v471_v54 = vmul.f32 0.125, %v427_v50 }
 0x193   :  { %v429_v63 = vrot.slane %v428_v61, 4  ;;  %v411_v3 = vmul.f32 %v863_v62, %v40_v58  ;;  %v491_v36 = vsel %vm490_vm6, %v481_v25, %v489_v21  ;;  %v484_v45 = vperm.slane %v863_v62, %v728_v41 }
 0x194   :  { %v439_v38 = vadd.f32 %v438_v24, %v437_v9 }
 0x195   :  { %v430_v8 = vadd.f32 %v429_v63, %v428_v61  ;;  %v456_v11 = vsel %vm413_vm3, %v411_v3, 0.0 }
 0x196   :  { %v457_v18 = vrot.slane %v456_v11, 4  ;;  %v440_v44 = vrot.slane %v439_v38, 1 }
 0x197   :  { %v431_v20 = vrot.slane %v430_v8, 2  ;;  %v388_v22 = vpop.permute.xlu1 %387  ;;  %v393_v23 = vpop.permute.xlu0 %392 }
 0x198   :  { %v409_v26 = vmul.f32 %v388_v22, %v38_v14  ;;  %v482_v29 = vperm.slane %v388_v22, %v728_v41  ;;  %v410_v32 = vmul.f32 %v393_v23, %v39_v10  ;;  %v458_v35 = vadd.f32 %v457_v18, %v456_v11 }
 0x199   :  { %v432_v31 = vadd.f32 %v431_v20, %v430_v8  ;;  %v483_v27 = vperm.slane %v393_v23, %v728_v41  ;;  %v441_v60 = vadd.f32 %v440_v44, %v439_v38 }
 0x19a   :  { %v442_v1 = vsel %vm413_vm3, %v409_v26, 0.0  ;;  %v449_v28 = vsel %vm413_vm3, %v410_v32, 0.0  ;;  %v493_v17 = vsel %vm492_vm7, %v482_v29, %v491_v36  ;;  %v459_v40 = vrot.slane %v458_v35, 2 }
 0x19b   :  { %v433_v37 = vrot.slane %v432_v31, 1  ;;  %v443_v12 = vrot.slane %v442_v1, 4  ;;  %v450_v39 = vrot.slane %v449_v28, 4  ;;  %v495_v2 = vsel %vm494_vm8, %v483_v27, %v493_v17 }
 0x19c   :  { %v460_v55 = vadd.f32 %v459_v40, %v458_v35  ;;  %v497_v57 = vsel %vm496_vm9, %v484_v45, %v495_v2  ;;  %v473_v11 = vmul.f32 0.125, %v441_v60 }
 0x19d   :  { %v444_v43 = vadd.f32 %v443_v12, %v442_v1  ;;  %v451_v4 = vadd.f32 %v450_v39, %v449_v28  ;;  %v434_v49 = vadd.f32 %v433_v37, %v432_v31  ;;  %v580_v31 = vld [vmem:[%s912_s3] ss:$0 sm:$0xff] }
 0x19e   :  { %v461_v13 = vrot.slane %v460_v55, 1 }
 0x19f   :  { %v445_v42 = vrot.slane %v444_v43, 2  ;;  %v452_v46 = vrot.slane %v451_v4, 2  ;;  %v472_v6 = vmul.f32 0.125, %v434_v49 }
 0x1a0   :  { %v403_v0 = vpop.permute.xlu1 %402  ;;  %v462_v10 = vadd.f32 %v461_v13, %v460_v55 }
 0x1a1   :  { %v446_v51 = vadd.f32 %v445_v42, %v444_v43  ;;  %v412_v52 = vmul.f32 %v403_v0, %v41_v19  ;;  %v485_v53 = vperm.slane %v403_v0, %v728_v41  ;;  %v453_v56 = vadd.f32 %v452_v46, %v451_v4 }
 0x1a2   :  { %v520_v41 = vsel %vm486_vm4, %v471_v54, %v470_v48  ;;  %v476_v24 = vmul.f32 0.125, %v462_v10 }
 0x1a3   :  { %v447_v58 = vrot.slane %v446_v51, 1  ;;  %v463_v47 = vsel %vm413_vm3, %v412_v52, 0.0  ;;  %v499_v59 = vsel %vm498_vm10, %v485_v53, %v497_v57  ;;  %v454_v61 = vrot.slane %v453_v56, 1 }
 0x1a4   :  { %v464_v62 = vrot.slane %v463_v47, 4  ;;  %v501_v63 = vsel %vm50_vm0, %v499_v59, 0.0  ;;  %v521_v9 = vsel %vm488_vm5, %v472_v6, %v520_v41  ;;  %vm549_vm0 = vcmask 261120  }
 0x1a5   :  { %v448_v7 = vadd.f32 %v447_v58, %v446_v51  ;;  %502 = vadd.xlane.f32.xlu0 %v501_v63  ;;  %v455_v3 = vadd.f32 %v454_v61, %v453_v56  ;;  %v522_v18 = vsel %vm490_vm6, %v473_v11, %v521_v9 }
 0x1a6   :  { %v465_v5 = vadd.f32 %v464_v62, %v463_v47 }
 0x1a7   :  { %v474_v8 = vmul.f32 0.125, %v448_v7  ;;  %v475_v15 = vmul.f32 0.125, %v455_v3 }
 0x1a8   :  { %v466_v14 = vrot.slane %v465_v5, 2 }
 0x1a9   :  { %v523_v20 = vsel %vm492_vm7, %v474_v8, %v522_v18 }
 0x1aa   :  { %v467_v16 = vadd.f32 %v466_v14, %v465_v5  ;;  %v524_v23 = vsel %vm494_vm8, %v475_v15, %v523_v20 }
 0x1ab   :  { %v525_v26 = vsel %vm496_vm9, %v476_v24, %v524_v23 }
 0x1ac   :  { %v468_v21 = vrot.slane %v467_v16, 1 }
 0x1ae   :  { %v469_v22 = vadd.f32 %v468_v21, %v467_v16 }
 0x1b0   :  { %v477_v25 = vmul.f32 0.125, %v469_v22 }
 0x1b2   :  { %v526_v29 = vsel %vm498_vm10, %v477_v25, %v525_v26 }
 0x1b3   :  { %568 = vmatmul.msk.f32.vlgmr.msra.gmra.mxu0 %vm413_vm3, %v526_v29 }
 0x218   :  { %v503_v30 = vpop.xlane.xlu0 %502 }
 0x219   :  { %v504_v32 = vmul.f32 0.125, %v503_v30 }
 0x21b   :  { %v511_v34 = vmul.f32 %v580_v31, %v504_v32 }
 0x230   :  { %v546_v35 = vpop.f32.mrf.mxu0 }
 0x231   :  { %v547_v1 = vadd.f32 %v546_v35, %v511_v34 }
 0x233   :  { %550 = vst.msk [vmem:[#allocation5] sm:$0xff] %vm549_vm0, %v547_v1 }
 0x234   :  { %561 = dma.vmem_to_hbm [thread:$0]  %s557_s16, 128, %s559_s19, [#allocation4]  }
 0x235   :  { %647 = dma.done.wait [#allocation4], 128  }
 0x236   :  { %648 = vsyncadd [#allocation4], 4294967168 }
 0x237   :  { %566 = vsyncpa [#allocation3], 1 }
 0x238   :  { %567 = vsyncpa [#allocation4], 1 }

</bundles_post_ra>
